<compile_context>
chip_gen: v7x
topology: tpu7x:2x2x1
jax: 0.10.0
libtpu: 0.0.40
codegen_flags: <defaults>
</compile_context>

<pallas_src>
import math

import numpy as np

import jax
import jax.numpy as jnp
from jax.experimental import pallas as pl
from jax.experimental.pallas import tpu as pltpu


# ---------------------------------------------------------------------------
# Kernel body:
#   acc = sum_{k in nonzero blocks of row tile i} adj_counts[i,k] @ beta[k]
#   out = alpha_with_bias + where(deg > 0, acc / deg, NaN)
# ---------------------------------------------------------------------------
def fout_kernel(kblk_ids_ref, kblk_cnt_ref,            # scalar-prefetch (SMEM)
                adj_ref, beta_ref, alpha_ref, deg_ref,  # inputs (VMEM)
                out_ref,                                 # output (VMEM)
                acc_ref):                                # scratch (VMEM f32)
    del kblk_ids_ref  # only used by the index_maps
    i = pl.program_id(0)
    k = pl.program_id(1)

    @pl.when(k == 0)
    def _init():
        acc_ref[...] = jnp.zeros_like(acc_ref)

    # Only the first kblk_cnt[i] steps correspond to real nonzero blocks;
    # padded steps revisit the previous block (no DMA) and are skipped here.
    @pl.when(k < kblk_cnt_ref[i])
    def _accumulate():
        acc_ref[...] += jnp.dot(adj_ref[...], beta_ref[...],
                                preferred_element_type=jnp.float32)

    @pl.when(k == pl.num_programs(1) - 1)
    def _finalize():
        deg = deg_ref[...]                                   # (tm, 1) f32 counts
        safe = jnp.where(deg > 0.0, deg, 1.0)
        gamma = jnp.where(deg > 0.0, acc_ref[...] / safe, jnp.nan)
        out_ref[...] = (alpha_ref[...] + gamma).astype(out_ref.dtype)


def _round_up(n, m):
    return ((n + m - 1) // m) * m


# ---------------------------------------------------------------------------
# Wrapper.  Requires concrete (non-traced) edge_index: the block-sparsity
# compaction is done host-side with numpy.
# ---------------------------------------------------------------------------
def fout_layer_pallas(x, wc, wn, bias, edge_index, *, tm=512, tk=512):
    """x: [N, Din], wc/wn: [Din, Dout], bias: [Dout], edge_index: [2, E]."""
    n, d_in = x.shape
    d_out = wc.shape[1]

    # ---- tile plan ---------------------------------------------------------
    n128 = _round_up(n, 128)
    tm = int(min(tm, n128))
    tk = int(min(tk, n128))
    # Prefer >= 2 row tiles (v7x has 2 TensorCores) when 128-alignment allows.
    if n128 // tm < 2 and n128 >= 256 and (n128 // 2) % 128 == 0:
        tm = n128 // 2
    assert tm % 128 == 0 and tk % 128 == 0, "tiles must be multiples of 128"
    # Keep tm/tk power-of-two multiples of 128 to avoid lcm over-padding.
    n_p = _round_up(n, math.lcm(tm, tk))
    d_out_p = _round_up(d_out, 128)                        # lane-dense output
    ni, nk = n_p // tm, n_p // tk

    # ---- hoisted dense compute (f32 XLA matmuls) ---------------------------
    xf = x.astype(jnp.float32)
    alpha = xf @ wc.astype(jnp.float32) + bias.astype(jnp.float32)[None, :]
    beta = xf @ wn.astype(jnp.float32)
    alpha_p = jnp.zeros((n_p, d_out_p), jnp.float32).at[:n, :d_out].set(alpha)
    beta_p = jnp.zeros((n_p, d_out_p), jnp.bfloat16).at[:n, :d_out].set(
        beta.astype(jnp.bfloat16))

    # ---- raw-count adjacency + out-degree ----------------------------------
    src = edge_index[0].astype(jnp.int32)
    dst = edge_index[1].astype(jnp.int32)
    adj_counts = jnp.zeros((n_p, n_p), jnp.float32).at[src, dst].add(1.0)
    adj_p = adj_counts.astype(jnp.bfloat16)     # small integer counts: exact
    deg_p = jnp.zeros((n_p, 1), jnp.float32).at[src, 0].add(1.0)

    # ---- block-sparsity compaction of the k axis (host side) ---------------
    src_np = np.asarray(src)
    dst_np = np.asarray(dst)
    occ = np.zeros((ni, nk), dtype=bool)
    if src_np.size:
        occ[src_np // tm, dst_np // tk] = True
    counts_np = occ.sum(axis=1).astype(np.int32)            # per row tile
    max_k = max(1, int(counts_np.max()) if counts_np.size else 0)
    ids_np = np.zeros((ni, max_k), dtype=np.int32)
    for i in range(ni):
        nz = np.nonzero(occ[i])[0].astype(np.int32)
        if nz.size:
            ids_np[i, :nz.size] = nz
            ids_np[i, nz.size:] = nz[-1]     # repeat last -> revisit, no DMA
    kblk_ids = jnp.asarray(ids_np.reshape(-1))               # 1-D SMEM table
    kblk_cnt = jnp.asarray(counts_np)

    # ---- VMEM budget derived from the tile plan (fits v7x's 64 MiB) --------
    bytes_per_buf = (tm * tk * 2            # adj tile (bf16)
                     + tk * d_out_p * 2     # beta tile (bf16)
                     + tm * d_out_p * 4     # alpha tile (f32)
                     + tm * 128 * 4         # deg tile (lane-padded f32)
                     + tm * d_out_p * 4)    # out tile (f32)
    vmem_est = 2 * bytes_per_buf + tm * d_out_p * 4          # 2x bufs + acc
    vmem_limit = int(min(60 << 20, max(32 << 20, 2 * vmem_est)))

    nnz_blocks = int(occ.sum())
    flops = 2 * nnz_blocks * tm * tk * d_out_p
    bytes_accessed = (nnz_blocks * (tm * tk * 2 + tk * d_out_p * 2)
                      + ni * (2 * tm * d_out_p * 4 + tm * 4))

    # index_maps: scalar-prefetch refs are passed positionally after grid idx.
    adj_map = lambda i, k, ids, cnt: (i, ids[i * max_k + k])
    beta_map = lambda i, k, ids, cnt: (ids[i * max_k + k], 0)
    row_map = lambda i, k, ids, cnt: (i, 0)

    out_p = pl.pallas_call(
        fout_kernel,
        out_shape=jax.ShapeDtypeStruct((n_p, d_out_p), jnp.float32),
        grid_spec=pltpu.PrefetchScalarGridSpec(
            num_scalar_prefetch=2,
            grid=(ni, max_k),
            in_specs=[
                pl.BlockSpec((tm, tk), adj_map),          # adjacency counts
                pl.BlockSpec((tk, d_out_p), beta_map),    # beta = x @ wn
                pl.BlockSpec((tm, d_out_p), row_map),     # alpha = x @ wc + b
                pl.BlockSpec((tm, 1), row_map),           # out-degree
            ],
            out_specs=pl.BlockSpec((tm, d_out_p), row_map),
            scratch_shapes=[pltpu.VMEM((tm, d_out_p), jnp.float32)],
        ),
        compiler_params=pltpu.CompilerParams(
            dimension_semantics=("parallel", "arbitrary"),
            vmem_limit_bytes=vmem_limit,
        ),
        cost_estimate=pl.CostEstimate(flops=flops, transcendentals=0,
                                      bytes_accessed=int(bytes_accessed)),
    )(kblk_ids, kblk_cnt, adj_p, beta_p, alpha_p, deg_p)

    return out_p[:n, :d_out]


# ---------------------------------------------------------------------------
# Parameter init mimicking torch_geometric `uniform(size, t)`:
# U(-1/sqrt(in_channels), 1/sqrt(in_channels)).
# ---------------------------------------------------------------------------
def init_params(key, in_channels, out_channels):
    bound = 1.0 / (in_channels ** 0.5)
    k_wc, k_wn, k_b = jax.random.split(key, 3)
    wc = jax.random.uniform(k_wc, (in_channels, out_channels), jnp.float32,
                            -bound, bound)
    wn = jax.random.uniform(k_wn, (in_channels, out_channels), jnp.float32,
                            -bound, bound)
    bias = jax.random.uniform(k_b, (out_channels,), jnp.float32, -bound, bound)
    return wc, wn, bias


# Pure-JAX reference (vectorized; mirrors the PyTorch loop semantics,
# including edge multiplicity and NaN for zero-out-degree nodes).
def fout_reference(x, wc, wn, bias, edge_index, num_nodes):
    xf = x.astype(jnp.float32)
    alpha = xf @ wc
    beta = xf @ wn
    src, dst = edge_index[0], edge_index[1]
    counts = jnp.zeros((num_nodes,), jnp.float32).at[src].add(1.0)
    sums = jnp.zeros((num_nodes, beta.shape[1]), jnp.float32).at[src].add(
        beta[dst])
    gamma = sums / counts[:, None]
    return alpha + gamma + bias


if __name__ == "__main__":
    key = jax.random.PRNGKey(0)
    num_nodes = 200
    in_channels = 32
    out_channels = 16

    k_x, k_e, k_p = jax.random.split(key, 3)
    x = jax.random.normal(k_x, (num_nodes, in_channels), jnp.float32)

    # Edge index: a ring (every node has >= 1 outgoing edge) plus random edges.
    ring_src = jnp.arange(num_nodes)
    ring_dst = (ring_src + 1) % num_nodes
    n_extra = 400
    extra_src = jax.random.randint(k_e, (n_extra,), 0, num_nodes)
    extra_dst = jax.random.randint(jax.random.fold_in(k_e, 1), (n_extra,),
                                   0, num_nodes)
    edge_index = jnp.stack(
        [jnp.concatenate([ring_src, extra_src]),
         jnp.concatenate([ring_dst, extra_dst])], axis=0
    ).astype(jnp.int32)

    wc, wn, bias = init_params(k_p, in_channels, out_channels)

    ref = fout_reference(x, wc, wn, bias, edge_index, num_nodes)
    assert bool(jnp.all(jnp.isfinite(ref)))        # ring guarantees deg >= 1

    # Default tile plan (auto-clamped) and an explicit small-tile plan that
    # exercises a multi-k grid plus the compacted-k index remapping.
    for tiles in ({}, {"tm": 128, "tk": 128}):
        out = fout_layer_pallas(x, wc, wn, bias, edge_index, **tiles)
        out = jax.block_until_ready(out)
        assert out.shape == (num_nodes, out_channels)
        max_err = float(jnp.max(jnp.abs(out - ref)))
        assert jnp.allclose(out, ref, atol=2e-2, rtol=2e-2), \
            f"mismatch vs reference (tiles={tiles}, max abs err {max_err})"

    print("KERNEL_OK")
</pallas_src>

<mosaic_0001>
module attributes {stable_mosaic.version = 11 : i64} {
  func.func @fout_kernel(%arg0: i32, %arg1: i32, %arg2: memref<2xi32, #tpu.memory_space<smem>>, %arg3: memref<2xi32, #tpu.memory_space<smem>>, %arg4: memref<128x256xbf16, #tpu.memory_space<vmem>>, %arg5: memref<256x128xbf16, #tpu.memory_space<vmem>>, %arg6: memref<128x128xf32, #tpu.memory_space<vmem>>, %arg7: memref<128x1xf32, #tpu.memory_space<vmem>>, %arg8: memref<128x128xf32, #tpu.memory_space<vmem>>, %arg9: memref<128x128xf32, #tpu.memory_space<vmem>>) attributes {dimension_semantics = [#tpu.dimension_semantics<parallel>, #tpu.dimension_semantics<arbitrary>], iteration_bounds = array<i64: 2, 1>, scalar_prefetch = 2 : i64, scratch_operands = 1 : i64, tpu.core_type = #tpu.core_type<tc>, window_params = [{transform_indices = @transform_0, window_bounds = array<i64: 128, 256>}, {transform_indices = @transform_1, window_bounds = array<i64: 256, 128>}, {transform_indices = @transform_2, window_bounds = array<i64: 128, 128>}, {transform_indices = @transform_3, window_bounds = array<i64: 128, 1>}, {transform_indices = @transform_4, window_bounds = array<i64: 128, 128>}]} {
    %c0_i32 = arith.constant 0 : i32
    %0 = arith.cmpi eq, %arg1, %c0_i32 : i32
    %1 = arith.extui %0 : i1 to i32
    %c0_i32_0 = arith.constant 0 : i32
    %2 = arith.cmpi ne, %1, %c0_i32_0 : i32
    scf.if %2 {
      %cst = arith.constant 0.000000e+00 : f32
      %11 = vector.broadcast %cst : f32 to vector<128x128xf32>
      %c0 = arith.constant 0 : index
      %c0_4 = arith.constant 0 : index
      %12 = vector.load %arg9[%c0, %c0_4] : memref<128x128xf32, #tpu.memory_space<vmem>>, vector<128x128xf32>
      tpu.vector_store %arg9[%c0, %c0_4], %11 {strides = array<i32>} : memref<128x128xf32, #tpu.memory_space<vmem>>, vector<128x128xf32>,
    } else {
    }
    %3 = arith.index_cast %arg0 : i32 to index
    %4 = memref.load %arg3[%3] : memref<2xi32, #tpu.memory_space<smem>>
    %5 = arith.cmpi slt, %arg1, %4 : i32
    %6 = arith.extui %5 : i1 to i32
    %c0_i32_1 = arith.constant 0 : i32
    %7 = arith.cmpi ne, %6, %c0_i32_1 : i32
    scf.if %7 {
      %c0 = arith.constant 0 : index
      %c0_4 = arith.constant 0 : index
      %11 = vector.load %arg9[%c0, %c0_4] : memref<128x128xf32, #tpu.memory_space<vmem>>, vector<128x128xf32>
      %c0_5 = arith.constant 0 : index
      %c0_6 = arith.constant 0 : index
      %12 = vector.load %arg4[%c0_5, %c0_6] : memref<128x256xbf16, #tpu.memory_space<vmem>>, vector<128x256xbf16>
      %c0_7 = arith.constant 0 : index
      %c0_8 = arith.constant 0 : index
      %13 = vector.load %arg5[%c0_7, %c0_8] : memref<256x128xbf16, #tpu.memory_space<vmem>>, vector<256x128xbf16>
      %cst = arith.constant dense<0.000000e+00> : vector<128x128xf32>
      %14 = tpu.matmul %12, %13, %cst {dimension_numbers = #tpu.dot_dimension_numbers<[1], [0], [0], [1], [0, 0, 1, 1], [], []>} : vector<128x256xbf16>, vector<256x128xbf16>, vector<128x128xf32> -> vector<128x128xf32>
      %15 = arith.addf %11, %14 : vector<128x128xf32>
      %c0_9 = arith.constant 0 : index
      %c0_10 = arith.constant 0 : index
      %16 = vector.load %arg9[%c0_9, %c0_10] : memref<128x128xf32, #tpu.memory_space<vmem>>, vector<128x128xf32>
      tpu.vector_store %arg9[%c0_9, %c0_10], %15 {strides = array<i32>} : memref<128x128xf32, #tpu.memory_space<vmem>>, vector<128x128xf32>,
    } else {
    }
    %c0_i32_2 = arith.constant 0 : i32
    %8 = arith.cmpi eq, %arg1, %c0_i32_2 : i32
    %9 = arith.extui %8 : i1 to i32
    %c0_i32_3 = arith.constant 0 : i32
    %10 = arith.cmpi ne, %9, %c0_i32_3 : i32
    scf.if %10 {
      %c0 = arith.constant 0 : index
      %c0_4 = arith.constant 0 : index
      %11 = vector.load %arg7[%c0, %c0_4] : memref<128x1xf32, #tpu.memory_space<vmem>>, vector<128x1xf32>
      %cst = arith.constant 0.000000e+00 : f32
      %12 = vector.broadcast %cst : f32 to vector<128x1xf32>
      %13 = arith.cmpf ogt, %11, %12 : vector<128x1xf32>
      %cst_5 = arith.constant 1.000000e+00 : f32
      %14 = vector.broadcast %cst_5 : f32 to vector<128x1xf32>
      %15 = arith.select %13, %11, %14 : vector<128x1xi1>, vector<128x1xf32>
      %cst_6 = arith.constant 0.000000e+00 : f32
      %16 = vector.broadcast %cst_6 : f32 to vector<128x1xf32>
      %17 = arith.cmpf ogt, %11, %16 : vector<128x1xf32>
      %c0_7 = arith.constant 0 : index
      %c0_8 = arith.constant 0 : index
      %18 = vector.load %arg9[%c0_7, %c0_8] : memref<128x128xf32, #tpu.memory_space<vmem>>, vector<128x128xf32>
      %19 = vector.broadcast %15 : vector<128x1xf32> to vector<128x128xf32>
      %20 = arith.divf %18, %19 : vector<128x128xf32>
      %cst_9 = arith.constant 0x7FC00000 : f32
      %21 = vector.shape_cast %17 : vector<128x1xi1> to vector<128x1xi1>
      %22 = vector.broadcast %21 : vector<128x1xi1> to vector<128x128xi1>
      %23 = vector.broadcast %cst_9 : f32 to vector<128x128xf32>
      %24 = arith.select %22, %20, %23 : vector<128x128xi1>, vector<128x128xf32>
      %c0_10 = arith.constant 0 : index
      %c0_11 = arith.constant 0 : index
      %25 = vector.load %arg6[%c0_10, %c0_11] : memref<128x128xf32, #tpu.memory_space<vmem>>, vector<128x128xf32>
      %26 = arith.addf %25, %24 : vector<128x128xf32>
      %c0_12 = arith.constant 0 : index
      %c0_13 = arith.constant 0 : index
      %27 = vector.load %arg8[%c0_12, %c0_13] : memref<128x128xf32, #tpu.memory_space<vmem>>, vector<128x128xf32>
      tpu.vector_store %arg8[%c0_12, %c0_13], %26 {strides = array<i32>} : memref<128x128xf32, #tpu.memory_space<vmem>>, vector<128x128xf32>,
    } else {
    }
    return
  }
  func.func @transform_0(%arg0: i32, %arg1: i32, %arg2: memref<2xi32, #tpu.memory_space<smem>>, %arg3: memref<2xi32, #tpu.memory_space<smem>>) -> (i32, i32) {
    %c1_i32 = arith.constant 1 : i32
    %0 = arith.muli %arg0, %c1_i32 : i32
    %1 = arith.addi %0, %arg1 : i32
    %2 = arith.index_cast %1 : i32 to index
    %3 = memref.load %arg2[%2] : memref<2xi32, #tpu.memory_space<smem>>
    %c0_i32 = arith.constant 0 : i32
    return %arg0, %3 : i32, i32
  }
  func.func @transform_1(%arg0: i32, %arg1: i32, %arg2: memref<2xi32, #tpu.memory_space<smem>>, %arg3: memref<2xi32, #tpu.memory_space<smem>>) -> (i32, i32) {
    %c1_i32 = arith.constant 1 : i32
    %0 = arith.muli %arg0, %c1_i32 : i32
    %1 = arith.addi %0, %arg1 : i32
    %2 = arith.index_cast %1 : i32 to index
    %3 = memref.load %arg2[%2] : memref<2xi32, #tpu.memory_space<smem>>
    %c0_i32 = arith.constant 0 : i32
    %c0_i32_0 = arith.constant 0 : i32
    return %3, %c0_i32 : i32, i32
  }
  func.func @transform_2(%arg0: i32, %arg1: i32, %arg2: memref<2xi32, #tpu.memory_space<smem>>, %arg3: memref<2xi32, #tpu.memory_space<smem>>) -> (i32, i32) {
    %c0_i32 = arith.constant 0 : i32
    %c0_i32_0 = arith.constant 0 : i32
    return %arg0, %c0_i32 : i32, i32
  }
  func.func @transform_3(%arg0: i32, %arg1: i32, %arg2: memref<2xi32, #tpu.memory_space<smem>>, %arg3: memref<2xi32, #tpu.memory_space<smem>>) -> (i32, i32) {
    %c0_i32 = arith.constant 0 : i32
    %c0_i32_0 = arith.constant 0 : i32
    return %arg0, %c0_i32 : i32, i32
  }
  func.func @transform_4(%arg0: i32, %arg1: i32, %arg2: memref<2xi32, #tpu.memory_space<smem>>, %arg3: memref<2xi32, #tpu.memory_space<smem>>) -> (i32, i32) {
    %c0_i32 = arith.constant 0 : i32
    %c0_i32_0 = arith.constant 0 : i32
    return %arg0, %c0_i32 : i32, i32
  }
}

</mosaic_0001>

<bundles_post_ra>
// kernel: tpu_custom_call.1
= control target key start
LH: loop header
LB: loop body
LE: loop exit
PB: predicated region body
PF: predicated region fallthrough
CT: control target
= control target key end

     0   :  { %s2307_s0 = inlined_call_operand.vmem [shape: s32[2], index: 0, kind: input, shape index: {}]   ;;  %s2308_s2 = inlined_call_operand.vmem [shape: bf16[256,256], index: 2, kind: input, shape index: {}]   ;;  %s2309_s3 = inlined_call_operand.hbm [shape: bf16[256,128], index: 3, kind: input, shape index: {}]   ;;  %s2310_s4 = inlined_call_operand.hbm [shape: f32[256,128], index: 4, kind: input, shape index: {}]   ;;  %s2311_s5 = inlined_call_operand.vmem [shape: f32[256,1], index: 5, kind: input, shape index: {}]   ;;  %s2312_s6 = inlined_call_operand.hbm [shape: f32[256,128], index: 6, kind: output, shape index: {}]   ;;  %s2313_s1 = inlined_call_operand.vmem [shape: s32[2], index: 1, kind: input, shape index: {}]  }
   0x1   :  { %2324 = sst [smem:[#allocation22_spill]] %s2309_s3  ;;  %s11_s23 = sshll.u32 %s2307_s0, 4  ;;  %s12_s23 = int_to_ptr.vmem [resolvable:$true] %s11_s23 }
   0x2   :  { %2325 = sst [smem:[#allocation23_spill]] %s2310_s4  ;;  %s15_s26 = sshll.u32 %s2313_s1, 4  ;;  %s16_s26 = int_to_ptr.vmem [resolvable:$true] %s15_s26 }
   0x3   :  { %s1555_s27 = scalar_lea.vmem %s12_s23, 16  ;;  %p1560_p1 = scmp.lt.s32.totalorder %s12_s23, %s12_s23 }
   0x4   :  { %p1556_p0 = scmp.ne.s32.totalorder %s12_s23, %s1555_s27  ;;  %p1561_p2 = scmp.lt.s32.totalorder %s1555_s27, %s1555_s27 }
   0x6   :  { %p1562_p3 = por %p1561_p2, %p1560_p1 }
   0x8   :  { %p1563_p4 = pnand %p1562_p3, %p1556_p0 }
   0xa   :  { %1566 = shalt.err (!%p1563_p4)  }
   0xb   :  { %s1753_s28 = smov [#allocation4]   ;;  %s1567_s29 = scalar_lea.vmem %s16_s26, 16 }
   0xc   :  { %14 = dma.vmem_to_smem %s12_s23, 16, %s1753_s28, [#allocation3] }
   0xd   :  { %p1568_p5 = scmp.ne.s32.totalorder %s16_s26, %s1567_s29  ;;  %p1572_p6 = scmp.lt.s32.totalorder %s16_s26, %s16_s26 }
   0xe   :  { %p1573_p7 = scmp.lt.s32.totalorder %s1567_s29, %s1567_s29 }
  0x10   :  { %p1574_p8 = por %p1573_p7, %p1572_p6 }
  0x12   :  { %p1575_p9 = pnand %p1574_p8, %p1568_p5 }
  0x14   :  { %1578 = shalt.err (!%p1575_p9)  }
  0x15   :  { %s1754_s0 = smov [#allocation5]  }
  0x16   :  { %18 = dma.vmem_to_smem %s16_s26, 16, %s1754_s0, [#allocation3] }
  0x17   :  { %1703 = dma.done.wait [#allocation3], 32 }
  0x18   :  { %1704 = vsyncadd [#allocation3], 4294967264 }
  0x19   :  { %20 = sfence }
  0x1a   :  { %21 = vsyncpa [#allocation7], 0 }
  0x1b   :  { %23 = vsyncpa [#allocation7 + $0x1], 0 }
  0x1c   :  { %24 = vsyncpa [#allocation10], 0 }
  0x1d   :  { %26 = vsyncpa [#allocation10 + $0x1], 0 }
  0x1e   :  { %27 = vsyncpa [#allocation8], 0 }
  0x1f   :  { %29 = vsyncpa [#allocation8 + $0x1], 0  ;;  %s1807_s1 = smov 0   ;;  %s1809_s30 = smov 0  }
  0x20   :  { %s1811_s7 = smov 0   ;;  %s1813_s8 = smov 0  }
  0x21   :  { %s1815_s9 = smov 0   ;;  %s1817_s10 = smov 0  }
  0x22   :  { %s1819_s11 = smov 0   ;;  %s1821_s12 = smov 0  }
  0x23   :  { %s1823_s13 = smov 0  }
  0x24 LB: > { %2326 = sst [smem:[#allocation18_spill]] %s1739_s10  ;;  %s2314_s14 = sadd.s32 4294967295, %s1751_s13   ;;  %s1751_s13 = sphi %s1823_s13, %s35_s13   ;;  %s1747_s12 = sphi %s1821_s12, %s2356_s12   ;;  %s1743_s11 = sphi %s1819_s11, %s2355_s11   ;;  %s1739_s10 = sphi %s1817_s10, %s2354_s10   ;;  %s1735_s9 = sphi %s1815_s9, %s2361_s9   ;;  %s1731_s8 = sphi %s1813_s8, %s2360_s8   ;;  %s1727_s7 = sphi %s1811_s7, %s2359_s7   ;;  %s1723_s30 = sphi %s1809_s30, %s2358_s30   ;;  %s1719_s1 = sphi %s1807_s1, %s2357_s1  }
  0x25   : > { %2327 = sst [smem:[#allocation19_spill]] %s1747_s12  ;;  %s47_s15 = sadd.s32 1, %s1747_s12 }
  0x26   : > { %p49_p10 = scmp.ge.s32.totalorder %s47_s15, 2  ;;  %s84_s16 = sld [smem:[#allocation4 + %s1747_s12]] }
  0x27   : > { %s90_s17 = sadd.s32 1, %s1739_s10  ;;  %p97_p11 = scmp.ne.s32.totalorder %s1739_s10, %s1735_s9 }
  0x28   : > { %s2363_s15 = smov (%p49_p10, %s47_s15), 0  ;;  %p2316_p12 = scmp.eq.s32.totalorder %s1751_s13, 0 }
  0x29   : > { %2328 = sst [smem:[#allocation20_spill]] %s2363_s15  ;;  %p103_p13 = scmp.ne.s32.totalorder %s1735_s9, %s1731_s8 }
  0x2a   : > { %s86_s18 = sld [smem:[#allocation4 + %s2363_s15]]  ;;  %p1863_p0 = scmp.eq.s32.totalorder %s2314_s14, 0 }
  0x2b   : > { %p1869_p1 = por %p2316_p12, %p97_p11  ;;  %p2315_p4 = scmp.lt.s32.totalorder %s1751_s13, 2 }
  0x2c   : > { %s2329_s19 = scalar_select %p1863_p0, 1, 0 }
  0x2d   : > { %p1876_p3 = por %p1863_p0, %p103_p13  ;;  %s224_s22 = sand.u32 1, %s1739_s10  }
  0x2e   : > { %s1238_s23 = sshll.u32 %s224_s22, 7  ;;  %p1886_p5 = pnand %p2315_p4, %p1869_p1 }
  0x2f   : > { %s2331_s21 = scalar_select %p1876_p3, 1, 0 }
  0x30   : > { %s87_s25 = ssub.s32 %s84_s16, %s86_s18  ;;  %s228_s26 = scalar_lea.vmem [#allocation6], %s1238_s23 }
  0x31   : > { %s237_s27 = sshll.u32 %s228_s26, 4  ;;  %p88_p6 = scmp.eq.s32.totalorder %s87_s25, 0  ;;  %s1890_s27 = int_to_ptr.vmem [resolvable:$true] %s237_s27 }
  0x32   : > { %s1376_s28 = scalar_select %p1869_p1, [#allocation4], [#allocation12] }
  0x33   : > { %s1895_s29 = scalar_select %p88_p6, %s1739_s10, %s90_s17  }
  0x34   : > { %s1377_s0 = scalar_select %p1869_p1, %s1747_s12, 0 }
  0x35   : > { %2333 = sst [smem:[#allocation21_spill]] %s1895_s29  ;;  %s2365_s28 = smov (!%p2315_p4, %s1376_s28), [#allocation13] }
  0x36   : > { %s2367_s0 = smov (!%p2315_p4, %s1377_s0), 0  ;;  %p1244_p7 = scmp.ge.s32.totalorder %s1751_s13, 1 }
  0x37   : > { %s230_s8 = sld [smem:[%s2365_s28 + %s2367_s0]]  ;;  %p275_p8 = scmp.lt.s32.totalorder %s1751_s13, 3 }
  0x38   : > { %s1235_s18 = sadd.s32 4294967294, %s1751_s13   ;;  %s113_s23 = ssub.s32 %s1747_s12, %s2363_s15 }
  0x39   : > { %p1906_p9 = pnand %p1244_p7, %p275_p8  ;;  %p1913_p10 = scmp.eq.s32.totalorder %s113_s23, 0 }
  0x3a   : > { %s2336_s3 = sld [smem:[#allocation22_spill]]  ;;  %s116_s28 = sadd.s32 1, %s1727_s7 }
  0x3b   : > { %s2334_s16 = scalar_select %p1906_p9, 1, 0 }
  0x3c   : > { %s1923_s0 = scalar_lea.sflag [#allocation7], %s224_s22  ;;  %p1581_p13 = pneg %p1886_p5 }
  0x3d   : > { %s1293_s25 = sshll.u32 %s230_s8, 11 }
  0x40   : > { %s1920_s14 = scalar_lea.hbm %s2336_s3, %s1293_s25  ;;  %s1584_s25 = scalar_lea.hbm %s2336_s3, 2048 }
  0x41   : > { %s1579_s29 = scalar_lea.hbm %s1920_s14, 2048  ;;  %p1585_p7 = scmp.lt.u32.totalorder %s1920_s14, %s2336_s3 }
  0x42   : > { %p1580_p11 = scmp.ne.s32.totalorder %s1920_s14, %s1579_s29  ;;  %p1586_p8 = scmp.lt.u32.totalorder %s1584_s25, %s1579_s29 }
  0x43   : > { %p1588_p4 = scmp.lt.u32.totalorder %s1579_s29, %s1920_s14 }
  0x44   : > { %p1582_p1 = pnand %p1581_p13, %p1580_p11  ;;  %p1587_p2 = por %p1586_p8, %p1585_p7 }
  0x46   : > { %p1583_p6 = pneg %p1582_p1  ;;  %p1589_p12 = por %p1588_p4, %p1587_p2 }
  0x48   : > { %p1590_p3 = pnand %p1589_p12, %p1583_p6 }
  0x4a   : > { %1593 = shalt.err (!%p1590_p3)
}
  0x4b   : > { %s1594_s22 = scalar_lea.vmem %s1890_s27, 2048  ;;  %s1755_s8 = smov [#allocation6]  }
  0x4c   : > { %p1595_p11 = scmp.ne.s32.totalorder %s1890_s27, %s1594_s22  ;;  %s1599_s23 = sshll.u32 %s1755_s8, 4  ;;  %s1600_s23 = int_to_ptr.vmem [resolvable:$false] %s1599_s23 }
  0x4d   : > { %s1601_s20 = scalar_lea.vmem %s1600_s23, 4096  ;;  %p1602_p0 = scmp.lt.s32.totalorder %s1890_s27, %s1600_s23 }
  0x4e   : > { %p1597_p1 = pnand %p1595_p11, %p1581_p13  ;;  %p1603_p7 = scmp.lt.s32.totalorder %s1601_s20, %s1594_s22 }
  0x50   : > { %p1598_p9 = pneg %p1597_p1  ;;  %p1604_p8 = por %p1603_p7, %p1602_p0 }
  0x52   : > { %p1605_p2 = pnand %p1604_p8, %p1598_p9 }
  0x54   : > { %1608 = shalt.err (!%p1605_p2)
}
  0x55   : > { %s1756_s29 = smov 64   ;;  %s1757_s25 = smov 4  }
  0x56   : > { %1389 = dma.hbm_to_vmem [thread:$0]  (!%p1886_p5), %s1920_s14, 2048, %s1890_s27, %s1923_s0, %s1756_s29, %s1756_s29, %s1757_s25  }
  0x57   : > { %s1956_s26 = scalar_select %p1913_p10, %s1727_s7, %s116_s28  }
  0x58   : > { %p123_p12 = scmp.ne.s32.totalorder %s1727_s7, %s1723_s30  ;;  %p129_p0 = scmp.ne.s32.totalorder %s1723_s30, %s1719_s1 }
  0x59   : > { %s2337_s22 = sadd.s32 4294967295, %s1751_s13   ;;  %p185_p4 = scmp.eq.s32.totalorder %s1235_s18, 1 }
  0x5a   : > { %p179_p3 = scmp.eq.s32.totalorder %s2337_s22, 1  ;;  %p2338_p9 = scmp.eq.s32.totalorder %s1751_s13, 0 }
  0x5b   : > { %p2339_p6 = scmp.ne.s32.totalorder %s2329_s19, 0  ;;  %p1978_p5 = por %p185_p4, %p129_p0 }
  0x5c   : > { %p125_p13 = por %p123_p12, %p2338_p9  ;;  %p1974_p1 = por %p179_p3, %p123_p12 }
  0x5d   : > { %p1970_p11 = por %p129_p0, %p2339_p6  ;;  %s247_s27 = sand.u32 1, %s1727_s7  }
  0x5e   : > { %s2341_s14 = scalar_select %p1974_p1, 1, 0 }
  0x5f   : > { %s2342_s24 = scalar_select %p1978_p5, 1, 0 }
  0x60   : > { %s1294_s17 = sshll.u32 %s1747_s12, 11  ;;  %s1241_s28 = sshll.u32 %s247_s27, 7 }
  0x61   : > { %s2343_s4 = sld [smem:[#allocation23_spill]]  ;;  %s251_s19 = scalar_lea.vmem [#allocation9], %s1241_s28 }
  0x62   : > { %s258_s20 = sshll.u32 %s251_s19, 4  ;;  %p2344_p10 = scmp.lt.s32.totalorder %s1751_s13, 2  ;;  %s1995_s20 = int_to_ptr.vmem [resolvable:$true] %s258_s20 }
  0x63   : > { %s1997_s25 = scalar_lea.sflag [#allocation10], %s247_s27 }
  0x64   : > { %p1991_p7 = pnand %p2344_p10, %p125_p13 }
  0x66   : > { %p1611_p2 = pneg %p1991_p7 }
  0x67   : > { %s1987_s23 = scalar_lea.hbm %s2343_s4, %s1294_s17  ;;  %s1614_s0 = scalar_lea.hbm %s2343_s4, 4096 }
  0x68   : > { %s1609_s22 = scalar_lea.hbm %s1987_s23, 2048  ;;  %p1615_p3 = scmp.lt.u32.totalorder %s1987_s23, %s2343_s4 }
  0x69   : > { %p1610_p8 = scmp.ne.s32.totalorder %s1987_s23, %s1609_s22  ;;  %p1616_p4 = scmp.lt.u32.totalorder %s1614_s0, %s1609_s22 }
  0x6a   : > { %p1618_p13 = scmp.lt.u32.totalorder %s1609_s22, %s1987_s23 }
  0x6b   : > { %p1612_p12 = pnand %p1611_p2, %p1610_p8  ;;  %p1617_p9 = por %p1616_p4, %p1615_p3 }
  0x6d   : > { %p1613_p0 = pneg %p1612_p12  ;;  %p1619_p6 = por %p1618_p13, %p1617_p9 }
  0x6f   : > { %p1620_p10 = pnand %p1619_p6, %p1613_p0 }
  0x71   : > { %1623 = shalt.err (!%p1620_p10)
}
  0x72   : > { %s1624_s27 = scalar_lea.vmem %s1995_s20, 2048  ;;  %s1758_s17 = smov [#allocation9]  }
  0x73   : > { %p1625_p8 = scmp.ne.s32.totalorder %s1995_s20, %s1624_s27  ;;  %s1629_s28 = sshll.u32 %s1758_s17, 4  ;;  %s1630_s28 = int_to_ptr.vmem [resolvable:$false] %s1629_s28 }
  0x74   : > { %s1631_s18 = scalar_lea.vmem %s1630_s28, 4096  ;;  %p1632_p1 = scmp.lt.s32.totalorder %s1995_s20, %s1630_s28 }
  0x75   : > { %p1627_p12 = pnand %p1625_p8, %p1611_p2  ;;  %p1633_p3 = scmp.lt.s32.totalorder %s1631_s18, %s1624_s27 }
  0x77   : > { %p1628_p5 = pneg %p1627_p12  ;;  %p1634_p4 = por %p1633_p3, %p1632_p1 }
  0x79   : > { %p1635_p9 = pnand %p1634_p4, %p1628_p5 }
  0x7b   : > { %1638 = shalt.err (!%p1635_p9)
}
  0x7c   : > { %s1759_s22 = smov 128   ;;  %s1760_s0 = smov 8  }
  0x7d   : > { %1392 = dma.hbm_to_vmem [thread:$0]  (!%p1991_p7), %s1987_s23, 2048, %s1995_s20, %s1997_s25, %s1759_s22, %s1759_s22, %s1760_s0  }
  0x7e   : > { %p2346_p2 = scmp.ne.s32.totalorder %s2334_s16, 0 }
  0x7f   : > { %s281_s19 = sand.u32 (!%p2346_p2), 1, %s1735_s9   ;;  %p2347_p1 = scmp.ne.s32.totalorder (!%p2346_p2), %s2331_s21, 0 }
  0x80   : > { %279 = sbr.rel (%p2346_p2) target bundleno = 636 (0x27c), region = 36  ;;  %s1245_s17 = sshll.u32 (!%p2346_p2), %s281_s19, 7 }
  0x81   : > { %s282_s28 = scalar_lea.sflag (!%p2346_p2), [#allocation7], %s281_s19  ;;  %s2028_s27 = scalar_lea.vmem (!%p2346_p2), [#allocation6], %s1245_s17 }
  0x87   : > { %1706 = dma.done.wait (%p2347_p1), %s282_s28, 2048  }
  0x88   : > { %1708 = vsyncadd (%p2347_p1), %s282_s28, 4294965248  ;;  %s2035_s18 = sand.u32 1, %s1723_s30  }
  0x89   : > { %s2320_s16 = sshll.u32 %s2035_s18, 7  ;;  %s291_s23 = scalar_lea.sflag [#allocation10], %s2035_s18 }
  0x8a   : > { %s2041_s20 = scalar_lea.vmem [#allocation9], %s2320_s16 }
  0x8b   : > { %1710 = dma.done.wait (%p1970_p11), %s291_s23, 2048  }
  0x8c   : > { %1712 = vsyncadd (%p1970_p11), %s291_s23, 4294965248  ;;  %s1248_s21 = sshll.u32 %s1743_s11, 4  ;;  %s342_s29 = sld [smem:[#allocation4 + %s1743_s11]]  ;;  %v1761_v0 = vmov 0.0  }
  0x8d   : > { %p2049_p5 = scmp.lt.s32.totalorder %s1248_s21, 31  ;;  %373 = vst [vmem:[#allocation2] sm:$0xff] %v1761_v0  ;;  %374 = vst [vmem:[#allocation2 + $0x8] sm:$0xff] %v1761_v0  ;;  %s389_s8 = sld [smem:[#allocation5 + %s1743_s11]] }
  0x8e   : > { %375 = vst [vmem:[#allocation2 + $0x10] sm:$0xff] %v1761_v0  ;;  %376 = vst [vmem:[#allocation2 + $0x18] sm:$0xff] %v1761_v0  ;;  %s2349_s10 = sshll.u32 %s2035_s18, 7 }
  0x8f   : > { %377 = vst [vmem:[#allocation2 + $0x20] sm:$0xff] %v1761_v0  ;;  %378 = vst [vmem:[#allocation2 + $0x28] sm:$0xff] %v1761_v0  ;;  %s2369_s21 = smov (!%p2049_p5, %s1248_s21), 31  ;;  %s2068_s25 = scalar_lea.vmem [#allocation11], %s2349_s10 }
  0x90   : > { %379 = vst [vmem:[#allocation2 + $0x30] sm:$0xff] %v1761_v0  ;;  %380 = vst [vmem:[#allocation2 + $0x38] sm:$0xff] %v1761_v0  ;;  %s1253_s22 = sshll.u32 %s2369_s21, 3  ;;  %s1250_s23 = sshll.u32 %s2369_s21, 1 }
  0x91   : > { %381 = vst [vmem:[#allocation2 + $0x40] sm:$0xff] %v1761_v0  ;;  %382 = vst [vmem:[#allocation2 + $0x48] sm:$0xff] %v1761_v0  ;;  %s2059_s17 = scalar_lea.vmem %s2311_s5, %s1253_s22 }
  0x92   : > { %383 = vst [vmem:[#allocation2 + $0x50] sm:$0xff] %v1761_v0  ;;  %384 = vst [vmem:[#allocation2 + $0x58] sm:$0xff] %v1761_v0  ;;  %s1249_s28 = sshll.u32 %s342_s29, 1 }
  0x93   : > { %385 = vst [vmem:[#allocation2 + $0x60] sm:$0xff] %v1761_v0  ;;  %386 = vst [vmem:[#allocation2 + $0x68] sm:$0xff] %v1761_v0  ;;  %p347_p11 = scmp.lt.s32.totalorder %s1249_s28, 1  ;;  %p1255_p7 = scmp.le.s32.totalorder %s389_s8, 0 }
  0x94   : > { %387 = vst [vmem:[#allocation2 + $0x70] sm:$0xff] %v1761_v0  ;;  %388 = vst [vmem:[#allocation2 + $0x78] sm:$0xff] %v1761_v0  ;;  %v1481_v1 = vld [vmem:[%s2028_s27 + $0x40] sm:$0xff] (!%p1255_p7)   ;;  %v1483_v3 = vld [vmem:[%s2028_s27 + $0x48] sm:$0xff] (!%p1255_p7)  }
  0x95   : > { %s2371_s28 = smov (!%p347_p11, %s1249_s28), 1  ;;  %393 = sbr.rel (%p1255_p7) target bundleno = 426 (0x1aa), region = 52 }
  0x96   : > { %s350_s16 = sadd.s32 %s1250_s23, %s2371_s28  ;;  %v1482_v2 = vld [vmem:[%s2028_s27] sm:$0xff] (!%p1255_p7)   ;;  %1296 = vmatprep.subr.bf16.mxu0 (!%p1255_p7), %v1481_v1  ;;  %1360 = vmatprep.subr.bf16.mxu1 (!%p1255_p7), %v1481_v1  ;;  %v1484_v4 = vld [vmem:[%s2028_s27 + $0x8] sm:$0xff] (!%p1255_p7)   ;;  %v1485_v5 = vld [vmem:[%s2028_s27 + $0x50] sm:$0xff] (!%p1255_p7)  }
  0x97   : > { %s1251_s3 = sshll.u32 %s350_s16, 2  ;;  %1297 = vmatpush3.bf16.msra.mxu0 (!%p1255_p7), %v1482_v2  ;;  %1368 = vmatpush3.bf16.msra.mxu1 (!%p1255_p7), %v1482_v2  ;;  %v1486_v6 = vld [vmem:[%s2028_s27 + $0x10] sm:$0xff] (!%p1255_p7)   ;;  %v1487_v7 = vld [vmem:[%s2028_s27 + $0x58] sm:$0xff] (!%p1255_p7)   ;;  %v1489_v9 = vld [vmem:[%s2028_s27 + $0x60] sm:$0xff] (!%p1255_p7)  }
  0x98   : > { %s2064_s12 = scalar_lea.vmem %s2308_s2, %s1251_s3  ;;  %1298 = vmatprep.subr.bf16.mxu0 (!%p1255_p7), %v1483_v3  ;;  %1361 = vmatprep.subr.bf16.mxu1 (!%p1255_p7), %v1483_v3  ;;  %v1488_v8 = vld [vmem:[%s2028_s27 + $0x18] sm:$0xff] (!%p1255_p7)   ;;  %v1490_v10 = vld [vmem:[%s2028_s27 + $0x20] sm:$0xff] (!%p1255_p7)   ;;  %v1491_v11 = vld [vmem:[%s2028_s27 + $0x68] sm:$0xff] (!%p1255_p7)  }
  0x99   : > { %v1499_v12 = vld [vmem:[%s2064_s12 + $0x4] ss:$8 sps:$4 sm:$0xff] (!%p1255_p7)   ;;  %v1493_v15 = vld [vmem:[%s2028_s27 + $0x70] sm:$0xff] (!%p1255_p7)   ;;  %v1495_v17 = vld [vmem:[%s2028_s27 + $0x78] sm:$0xff] (!%p1255_p7)  }
  0x9a   : > { %v1502_v13 = vld [vmem:[%s2064_s12 + $0x44] ss:$8 sps:$4 sm:$0xff] (!%p1255_p7)   ;;  %666 = vmatprep.mubr.bf16.mxu0 (!%p1255_p7), %v1499_v12  ;;  %v1494_v16 = vld [vmem:[%s2028_s27 + $0x30] sm:$0xff] (!%p1255_p7)   ;;  %v1496_v18 = vld [vmem:[%s2028_s27 + $0x38] sm:$0xff] (!%p1255_p7)  }
  0x9b   : > { %1299 = vmatpush3.bf16.msra.mxu0 (!%p1255_p7), %v1484_v4  ;;  %1369 = vmatpush3.bf16.msra.mxu1 (!%p1255_p7), %v1484_v4  ;;  %v1492_v14 = vld [vmem:[%s2028_s27 + $0x28] sm:$0xff] (!%p1255_p7)   ;;  %v1503_v21 = vld [vmem:[%s2064_s12 + $0x14] ss:$8 sps:$4 sm:$0xff] (!%p1255_p7)   ;;  %v1507_v23 = vld [vmem:[%s2064_s12 + $0x10] ss:$8 sps:$4 sm:$0xff] (!%p1255_p7)  }
  0x9c   : > { %1300 = vmatprep.subr.bf16.mxu0 %v1485_v5  ;;  %1362 = vmatprep.subr.bf16.mxu1 %v1485_v5  ;;  %v1497_v19 = vld [vmem:[%s2064_s12] ss:$8 sps:$4 sm:$0xff]   ;;  %v1505_v22 = vld [vmem:[%s2064_s12 + $0x54] ss:$8 sps:$4 sm:$0xff]   ;;  %v1508_v24 = vld [vmem:[%s2064_s12 + $0x50] ss:$8 sps:$4 sm:$0xff]  }
  0x9d   : > { %698 = vmatprep.mubr.bf16.mxu1 %v1502_v13  ;;  %v1500_v20 = vld [vmem:[%s2064_s12 + $0x40] ss:$8 sps:$4 sm:$0xff]   ;;  %v1509_v25 = vld [vmem:[%s2064_s12 + $0x24] ss:$8 sps:$4 sm:$0xff]   ;;  %v1515_v29 = vld [vmem:[%s2064_s12 + $0x34] ss:$8 sps:$4 sm:$0xff]  }
  0x9e   : > { %v1511_v26 = vld [vmem:[%s2064_s12 + $0x64] ss:$8 sps:$4 sm:$0xff]   ;;  %v1513_v27 = vld [vmem:[%s2064_s12 + $0x20] ss:$8 sps:$4 sm:$0xff]   ;;  %v1517_v30 = vld [vmem:[%s2064_s12 + $0x74] ss:$8 sps:$4 sm:$0xff]  }
  0x9f   : > { %1301 = vmatpush3.bf16.msra.mxu0 %v1486_v6  ;;  %1370 = vmatpush3.bf16.msra.mxu1 %v1486_v6  ;;  %v1514_v28 = vld [vmem:[%s2064_s12 + $0x60] ss:$8 sps:$4 sm:$0xff]   ;;  %v1519_v31 = vld [vmem:[%s2064_s12 + $0x30] ss:$8 sps:$4 sm:$0xff]  }
  0xa0   : > { %1302 = vmatprep.subr.bf16.mxu0 %v1487_v7  ;;  %1363 = vmatprep.subr.bf16.mxu1 %v1487_v7  ;;  %v1520_v32 = vld [vmem:[%s2064_s12 + $0x70] ss:$8 sps:$4 sm:$0xff]   ;;  %v394_v35 = vld [vmem:[#allocation2] sm:$0xff]  ;;  %v395_v43 = vld [vmem:[#allocation2 + $0x8] sm:$0xff] }
  0xa1   : > { %v402_v37 = vld [vmem:[#allocation2 + $0x40] sm:$0xff]  ;;  %v403_v45 = vld [vmem:[#allocation2 + $0x48] sm:$0xff]  ;;  %v396_v55 = vld [vmem:[#allocation2 + $0x10] sm:$0xff] }
  0xa2   : > { %v404_v57 = vld [vmem:[#allocation2 + $0x50] sm:$0xff]  ;;  %v397_v63 = vld [vmem:[#allocation2 + $0x18] sm:$0xff]  ;;  %v406_v13 = vld [vmem:[#allocation2 + $0x60] sm:$0xff] }
  0xa3   : > { %1303 = vmatpush3.bf16.msra.mxu0 %v1488_v8  ;;  %1371 = vmatpush3.bf16.msra.mxu1 %v1488_v8  ;;  %v405_v1 = vld [vmem:[#allocation2 + $0x58] sm:$0xff] }
  0xa4   : > { %1304 = vmatprep.subr.bf16.mxu0 %v1489_v9  ;;  %1364 = vmatprep.subr.bf16.mxu1 %v1489_v9 }
  0xa7   : > { %1305 = vmatpush3.bf16.msra.mxu0 %v1490_v10  ;;  %1372 = vmatpush3.bf16.msra.mxu1 %v1490_v10 }
  0xa8   : > { %1306 = vmatprep.subr.bf16.mxu0 %v1491_v11  ;;  %1365 = vmatprep.subr.bf16.mxu1 %v1491_v11  ;;  %v398_v11 = vld [vmem:[#allocation2 + $0x20] sm:$0xff] }
  0xab   : > { %1307 = vmatpush3.bf16.msra.mxu0 %v1492_v14  ;;  %1373 = vmatpush3.bf16.msra.mxu1 %v1492_v14 }
  0xac   : > { %1308 = vmatprep.subr.bf16.mxu0 %v1493_v15  ;;  %1366 = vmatprep.subr.bf16.mxu1 %v1493_v15 }
  0xaf   : > { %1309 = vmatpush3.bf16.msra.mxu0 %v1494_v16  ;;  %1374 = vmatpush3.bf16.msra.mxu1 %v1494_v16 }
  0xb0   : > { %1310 = vmatprep.subr.bf16.mxu0 %v1495_v17  ;;  %1367 = vmatprep.subr.bf16.mxu1 %v1495_v17 }
  0xb3   : > { %1311 = vmatpush3.bf16.msra.mxu0 %v1496_v18  ;;  %1375 = vmatpush3.bf16.msra.mxu1 %v1496_v18 }
  0xb6   : > { %667 = vmatmul.mubr.bf16.vlgmr.msra.gmra.mrb[0].mxu0 %v1497_v19  ;;  %699 = vmatmul.mubr.bf16.vlgmr.msra.gmra.mrb[0].mxu1 %v1500_v20  ;;  %v399_v19 = vld [vmem:[#allocation2 + $0x28] sm:$0xff] }
  0xb7   : > { %674 = vmatprep.mubr.bf16.mxu0 %v1503_v21  ;;  %706 = vmatprep.mubr.bf16.mxu1 %v1505_v22  ;;  %v407_v21 = vld [vmem:[#allocation2 + $0x68] sm:$0xff] }
  0xbe   : > { %675 = vmatmul.mubr.bf16.gmra.mrb[4].mxu0 %v1507_v23  ;;  %707 = vmatmul.mubr.bf16.gmra.mrb[4].mxu1 %v1508_v24 }
  0xbf   : > { %682 = vmatprep.mubr.bf16.mxu0 %v1509_v25  ;;  %714 = vmatprep.mubr.bf16.mxu1 %v1511_v26 }
  0xc6   : > { %683 = vmatmul.mubr.bf16.gmra.mrb[8].mxu0 %v1513_v27  ;;  %715 = vmatmul.mubr.bf16.gmra.mrb[8].mxu1 %v1514_v28 }
  0xc7   : > { %690 = vmatprep.mubr.bf16.mxu0 %v1515_v29  ;;  %722 = vmatprep.mubr.bf16.mxu1 %v1517_v30 }
  0xce   : > { %691 = vmatmul.mubr.bf16.gmra.mrb[12].mxu0 %v1519_v31  ;;  %723 = vmatmul.mubr.bf16.gmra.mrb[12].mxu1 %v1520_v32  ;;  %v400_v31 = vld [vmem:[#allocation2 + $0x30] sm:$0xff] }
 0x189   : > { %v1312_v33 = vpop.f32.mrb[0].mxu0  ;;  %v1336_v34 = vpop.f32.mrb[0].mxu1 }
 0x18a   : > { %v1313_v36 = vpop.f32.mrb[1].mxu0  ;;  %v1337_v38 = vpop.f32.mrb[1].mxu1 }
 0x18b   : > { %v1314_v39 = vadd.f32 %v1313_v36, %v1312_v33  ;;  %v1338_v40 = vadd.f32 %v1337_v38, %v1336_v34  ;;  %v1315_v41 = vpop.f32.mrb[2].mxu0  ;;  %v1339_v42 = vpop.f32.mrb[2].mxu1  ;;  %v408_v33 = vld [vmem:[#allocation2 + $0x70] sm:$0xff] }
 0x18c   : > { %v1316_v44 = vpop.f32.mrb[3].mxu0  ;;  %v1340_v46 = vpop.f32.mrb[3].mxu1 }
 0x18d   : > { %v731_v47 = vadd.f32 %v1314_v39, %v394_v35  ;;  %v739_v48 = vadd.f32 %v1338_v40, %v402_v37  ;;  %v1317_v49 = vadd.f32 %v1316_v44, %v1315_v41  ;;  %v1341_v50 = vadd.f32 %v1340_v46, %v1339_v42  ;;  %v401_v39 = vld [vmem:[#allocation2 + $0x38] sm:$0xff] }
 0x18e   : > { %v409_v41 = vld [vmem:[#allocation2 + $0x78] sm:$0xff] }
 0x18f   : > { %747 = vst [vmem:[#allocation2] sm:$0xff] %v731_v47  ;;  %755 = vst [vmem:[#allocation2 + $0x40] sm:$0xff] %v739_v48  ;;  %v732_v51 = vadd.f32 %v1317_v49, %v395_v43  ;;  %v740_v52 = vadd.f32 %v1341_v50, %v403_v45 }
 0x191   : > { %748 = vst [vmem:[#allocation2 + $0x8] sm:$0xff] %v732_v51  ;;  %756 = vst [vmem:[#allocation2 + $0x48] sm:$0xff] %v740_v52  ;;  %v1318_v53 = vpop.f32.mrb[4].mxu0  ;;  %v1342_v54 = vpop.f32.mrb[4].mxu1 }
 0x192   : > { %v1319_v56 = vpop.f32.mrb[5].mxu0  ;;  %v1343_v58 = vpop.f32.mrb[5].mxu1 }
 0x193   : > { %v1320_v59 = vadd.f32 %v1319_v56, %v1318_v53  ;;  %v1344_v60 = vadd.f32 %v1343_v58, %v1342_v54  ;;  %v1321_v61 = vpop.f32.mrb[6].mxu0  ;;  %v1345_v62 = vpop.f32.mrb[6].mxu1 }
 0x194   : > { %v1322_v0 = vpop.f32.mrb[7].mxu0  ;;  %v1346_v2 = vpop.f32.mrb[7].mxu1 }
 0x195   : > { %v733_v3 = vadd.f32 %v1320_v59, %v396_v55  ;;  %v741_v4 = vadd.f32 %v1344_v60, %v404_v57  ;;  %v1323_v5 = vadd.f32 %v1322_v0, %v1321_v61  ;;  %v1347_v6 = vadd.f32 %v1346_v2, %v1345_v62 }
 0x197   : > { %749 = vst [vmem:[#allocation2 + $0x10] sm:$0xff] %v733_v3  ;;  %757 = vst [vmem:[#allocation2 + $0x50] sm:$0xff] %v741_v4  ;;  %v734_v7 = vadd.f32 %v1323_v5, %v397_v63  ;;  %v742_v8 = vadd.f32 %v1347_v6, %v405_v1 }
 0x199   : > { %750 = vst [vmem:[#allocation2 + $0x18] sm:$0xff] %v734_v7  ;;  %758 = vst [vmem:[#allocation2 + $0x58] sm:$0xff] %v742_v8  ;;  %v1324_v9 = vpop.f32.mrb[8].mxu0  ;;  %v1348_v10 = vpop.f32.mrb[8].mxu1 }
 0x19a   : > { %v1325_v12 = vpop.f32.mrb[9].mxu0  ;;  %v1349_v14 = vpop.f32.mrb[9].mxu1 }
 0x19b   : > { %v1326_v15 = vadd.f32 %v1325_v12, %v1324_v9  ;;  %v1350_v16 = vadd.f32 %v1349_v14, %v1348_v10  ;;  %v1327_v17 = vpop.f32.mrb[10].mxu0  ;;  %v1351_v18 = vpop.f32.mrb[10].mxu1 }
 0x19c   : > { %v1328_v20 = vpop.f32.mrb[11].mxu0  ;;  %v1352_v22 = vpop.f32.mrb[11].mxu1 }
 0x19d   : > { %v735_v23 = vadd.f32 %v1326_v15, %v398_v11  ;;  %v743_v24 = vadd.f32 %v1350_v16, %v406_v13  ;;  %v1329_v25 = vadd.f32 %v1328_v20, %v1327_v17  ;;  %v1353_v26 = vadd.f32 %v1352_v22, %v1351_v18 }
 0x19f   : > { %751 = vst [vmem:[#allocation2 + $0x20] sm:$0xff] %v735_v23  ;;  %759 = vst [vmem:[#allocation2 + $0x60] sm:$0xff] %v743_v24  ;;  %v736_v27 = vadd.f32 %v1329_v25, %v399_v19  ;;  %v744_v28 = vadd.f32 %v1353_v26, %v407_v21 }
 0x1a1   : > { %752 = vst [vmem:[#allocation2 + $0x28] sm:$0xff] %v736_v27  ;;  %760 = vst [vmem:[#allocation2 + $0x68] sm:$0xff] %v744_v28  ;;  %v1330_v29 = vpop.f32.mrb[12].mxu0  ;;  %v1354_v30 = vpop.f32.mrb[12].mxu1 }
 0x1a2   : > { %v1331_v32 = vpop.f32.mrb[13].mxu0  ;;  %v1355_v34 = vpop.f32.mrb[13].mxu1 }
 0x1a3   : > { %v1332_v35 = vadd.f32 %v1331_v32, %v1330_v29  ;;  %v1356_v36 = vadd.f32 %v1355_v34, %v1354_v30  ;;  %v1333_v37 = vpop.f32.mrb[14].mxu0  ;;  %v1357_v38 = vpop.f32.mrb[14].mxu1 }
 0x1a4   : > { %v1334_v40 = vpop.f32.mrb[15].mxu0  ;;  %v1358_v42 = vpop.f32.mrb[15].mxu1 }
 0x1a5   : > { %v737_v43 = vadd.f32 %v1332_v35, %v400_v31  ;;  %v745_v44 = vadd.f32 %v1356_v36, %v408_v33  ;;  %v1335_v45 = vadd.f32 %v1334_v40, %v1333_v37  ;;  %v1359_v46 = vadd.f32 %v1358_v42, %v1357_v38 }
 0x1a7   : > { %753 = vst [vmem:[#allocation2 + $0x30] sm:$0xff] %v737_v43  ;;  %761 = vst [vmem:[#allocation2 + $0x70] sm:$0xff] %v745_v44  ;;  %v738_v47 = vadd.f32 %v1335_v45, %v401_v39  ;;  %v746_v48 = vadd.f32 %v1359_v46, %v409_v41 }
 0x1a9   : > { %754 = vst [vmem:[#allocation2 + $0x38] sm:$0xff] %v738_v47  ;;  %762 = vst [vmem:[#allocation2 + $0x78] sm:$0xff] %v746_v48 }
 0x1aa PF: > { %v2103_v49 = vld [vmem:[%s2059_s17 + $0x10] sm:$0xff]  ;;  %v2106_v50 = vld [vmem:[%s2059_s17] sm:$0xff]  ;;  %v2109_v51 = vld [vmem:[%s2059_s17 + $0x18] sm:$0xff]  ;;  %v1762_v52 = vmov 0   ;;  %s1295_s3 = sshll.u32 %s1743_s11, 11  ;;  %s1100_s4 = sshll.u32 %s2068_s25, 4  ;;  %s2247_s4 = int_to_ptr.vmem [resolvable:$true] %s1100_s4 }
 0x1ab   : > { %1522 = vset.pattern.permute.xlu1 %v1762_v52  ;;  %1521 = vset.pattern.permute.xlu0 %v1762_v52  ;;  %vm784_vm0 = vcmp.gt.f32.partialorder %v2103_v49, 0.0  ;;  %vm782_vm1 = vcmp.gt.f32.partialorder %v2106_v50, 0.0  ;;  %vm785_vm2 = vcmp.gt.f32.partialorder %v2109_v51, 0.0  ;;  %v767_v53 = vld [vmem:[%s2059_s17 + $0x8] sm:$0xff]  ;;  %v2127_v57 = vld [vmem:[%s2059_s17 + $0x20] sm:$0xff]  ;;  %v773_v60 = vld [vmem:[%s2059_s17 + $0x38] sm:$0xff]  ;;  %s2245_s11 = scalar_lea.hbm %s2312_s6, %s1295_s3 }
 0x1ac   : > { %v800_v54 = vsel %vm784_vm0, %v2103_v49, 1.0  ;;  %v798_v55 = vsel %vm782_vm1, %v2106_v50, 1.0  ;;  %vm783_vm3 = vcmp.gt.f32.partialorder %v767_v53, 0.0  ;;  %v2124_v56 = vld [vmem:[%s2059_s17 + $0x28] sm:$0xff]  ;;  %v801_v58 = vsel %vm785_vm2, %v2109_v51, 1.0  ;;  %v772_v61 = vld [vmem:[%s2059_s17 + $0x30] sm:$0xff] }
 0x1ad   : > { %842 = vperm.xlu1 %1522, %v800_v54   ;;  %832 = vperm.xlu0 %1521, %v798_v55   ;;  %v799_v59 = vsel %vm783_vm3, %v767_v53, 1.0  ;;  %vm787_vm4 = vcmp.gt.f32.partialorder %v2124_v56, 0.0  ;;  %vm786_vm5 = vcmp.gt.f32.partialorder %v2127_v57, 0.0  ;;  %vm789_vm6 = vcmp.gt.f32.partialorder %v773_v60, 0.0  ;;  %v775_v0 = vld [vmem:[%s2059_s17 + $0x48] sm:$0xff]  ;;  %v774_v1 = vld [vmem:[%s2059_s17 + $0x40] sm:$0xff] }
 0x1ae   : > { %v803_v62 = vsel %vm787_vm4, %v2124_v56, 1.0  ;;  %v802_v63 = vsel %vm786_vm5, %v2127_v57, 1.0  ;;  %vm788_vm7 = vcmp.gt.f32.partialorder %v772_v61, 0.0  ;;  %v805_v2 = vsel %vm789_vm6, %v773_v60, 1.0  ;;  %v777_v4 = vld [vmem:[%s2059_s17 + $0x58] sm:$0xff]  ;;  %v776_v5 = vld [vmem:[%s2059_s17 + $0x50] sm:$0xff] }
 0x1af   : > { %v804_v3 = vsel %vm788_vm7, %v772_v61, 1.0  ;;  %vm791_vm8 = vcmp.gt.f32.partialorder %v775_v0, 0.0  ;;  %vm790_vm9 = vcmp.gt.f32.partialorder %v774_v1, 0.0  ;;  %vm793_vm10 = vcmp.gt.f32.partialorder %v777_v4, 0.0  ;;  %v779_v8 = vld [vmem:[%s2059_s17 + $0x68] sm:$0xff]  ;;  %v778_v9 = vld [vmem:[%s2059_s17 + $0x60] sm:$0xff] }
 0x1b0   : > { %v807_v6 = vsel %vm791_vm8, %v775_v0, 1.0  ;;  %v806_v7 = vsel %vm790_vm9, %v774_v1, 1.0  ;;  %vm792_vm11 = vcmp.gt.f32.partialorder %v776_v5, 0.0  ;;  %v809_v10 = vsel %vm793_vm10, %v777_v4, 1.0  ;;  %v781_v12 = vld [vmem:[%s2059_s17 + $0x78] sm:$0xff]  ;;  %v780_v13 = vld [vmem:[%s2059_s17 + $0x70] sm:$0xff] }
 0x1b1   : > { %847 = vperm.xlu1 %1522, %v801_v58   ;;  %837 = vperm.xlu0 %1521, %v799_v59   ;;  %v808_v11 = vsel %vm792_vm11, %v776_v5, 1.0  ;;  %vm795_vm12 = vcmp.gt.f32.partialorder %v779_v8, 0.0  ;;  %vm794_vm13 = vcmp.gt.f32.partialorder %v778_v9, 0.0  ;;  %vm797_vm14 = vcmp.gt.f32.partialorder %v781_v12, 0.0  ;;  %v814_v53 = vld [vmem:[#allocation2] sm:$0xff]  ;;  %v1039_v55 = vld [vmem:[%s2041_s20 + $0x8] sm:$0xff] }
 0x1b2   : > { %v811_v14 = vsel %vm795_vm12, %v779_v8, 1.0  ;;  %v810_v15 = vsel %vm794_vm13, %v778_v9, 1.0  ;;  %vm796_vm15 = vcmp.gt.f32.partialorder %v780_v13, 0.0  ;;  %v813_v16 = vsel %vm797_vm14, %v781_v12, 1.0  ;;  %v1038_v59 = vld [vmem:[%s2041_s20] sm:$0xff]  ;;  %v1040_v9 = vld [vmem:[%s2041_s20 + $0x10] sm:$0xff] }
 0x1b3   : > { %v812_v17 = vsel %vm796_vm15, %v780_v13, 1.0  ;;  %v943_v18 = vsel %vm783_vm3, 1, %v1762_v52  ;;  %v942_v19 = vsel %vm782_vm1, 1, %v1762_v52  ;;  %v945_v20 = vsel %vm785_vm2, 1, %v1762_v52  ;;  %v819_v12 = vld [vmem:[#allocation2 + $0x28] sm:$0xff]  ;;  %v818_v13 = vld [vmem:[#allocation2 + $0x20] sm:$0xff] }
 0x1b4   : > { %v944_v21 = vsel %vm784_vm0, 1, %v1762_v52  ;;  %v947_v22 = vsel %vm787_vm4, 1, %v1762_v52  ;;  %v946_v23 = vsel %vm786_vm5, 1, %v1762_v52  ;;  %v949_v24 = vsel %vm789_vm6, 1, %v1762_v52  ;;  %s1087_s15 = scalar_lea.sflag [#allocation8], %s2035_s18  ;;  %s1639_s27 = scalar_lea.vmem %s2247_s4, 2048 }
 0x1b5   : > { %857 = vperm.xlu1 %1522, %v803_v62   ;;  %852 = vperm.xlu0 %1521, %v802_v63   ;;  %v948_v25 = vsel %vm788_vm7, 1, %v1762_v52  ;;  %v951_v26 = vsel %vm791_vm8, 1, %v1762_v52  ;;  %v950_v27 = vsel %vm790_vm9, 1, %v1762_v52  ;;  %v953_v28 = vsel %vm793_vm10, 1, %v1762_v52  ;;  %v817_v62 = vld [vmem:[#allocation2 + $0x18] sm:$0xff]  ;;  %v816_v63 = vld [vmem:[#allocation2 + $0x10] sm:$0xff]  ;;  %p1640_p0 = scmp.ne.s32.totalorder %s2247_s4, %s1639_s27 }
 0x1b6   : > { %v952_v29 = vsel %vm792_vm11, 1, %v1762_v52  ;;  %v955_v30 = vsel %vm795_vm12, 1, %v1762_v52  ;;  %v954_v31 = vsel %vm794_vm13, 1, %v1762_v52  ;;  %v957_v32 = vsel %vm797_vm14, 1, %v1762_v52  ;;  %p2350_p13 = scmp.ne.s32.totalorder %s2341_s14, 0  ;;  %s1763_s16 = smov [#allocation11]  }
 0x1b7   : > { %v956_v33 = vsel %vm796_vm15, 1, %v1762_v52  ;;  %v815_v52 = vld [vmem:[#allocation2 + $0x8] sm:$0xff] }
 0x1b8   : > { %p1641_p6 = pnand %p1640_p0, %p2350_p13 }
 0x1b9   : > { %867 = vperm.xlu1 %1522, %v805_v2   ;;  %862 = vperm.xlu0 %1521, %v804_v3  }
 0x1ba   : > { %p1642_p10 = pneg %p1641_p6 }
 0x1bd   : > { %877 = vperm.xlu1 %1522, %v807_v6   ;;  %872 = vperm.xlu0 %1521, %v806_v7   ;;  %v1041_v6 = vld [vmem:[%s2041_s20 + $0x18] sm:$0xff] }
 0x1c1   : > { %887 = vperm.xlu1 %1522, %v809_v10   ;;  %882 = vperm.xlu0 %1521, %v808_v11  }
 0x1c5   : > { %897 = vperm.xlu1 %1522, %v811_v14   ;;  %892 = vperm.xlu0 %1521, %v810_v15  }
 0x1c9   : > { %907 = vperm.xlu1 %1522, %v813_v16   ;;  %902 = vperm.xlu0 %1521, %v812_v17  }
 0x1cd   : > { %962 = vperm.xlu1 %1522, %v943_v18   ;;  %959 = vperm.xlu0 %1521, %v942_v19  }
 0x1d1   : > { %968 = vperm.xlu1 %1522, %v945_v20   ;;  %965 = vperm.xlu0 %1521, %v944_v21   ;;  %v1043_v20 = vld [vmem:[%s2041_s20 + $0x28] sm:$0xff] }
 0x1d5   : > { %974 = vperm.xlu1 %1522, %v947_v22   ;;  %971 = vperm.xlu0 %1521, %v946_v23   ;;  %v1042_v23 = vld [vmem:[%s2041_s20 + $0x20] sm:$0xff] }
 0x1d9   : > { %980 = vperm.xlu1 %1522, %v949_v24   ;;  %977 = vperm.xlu0 %1521, %v948_v25  }
 0x1dd   : > { %986 = vperm.xlu1 %1522, %v951_v26   ;;  %983 = vperm.xlu0 %1521, %v950_v27   ;;  %v821_v26 = vld [vmem:[#allocation2 + $0x38] sm:$0xff]  ;;  %v820_v27 = vld [vmem:[#allocation2 + $0x30] sm:$0xff] }
 0x1e1   : > { %992 = vperm.xlu1 %1522, %v953_v28   ;;  %989 = vperm.xlu0 %1521, %v952_v29  }
 0x1e5   : > { %998 = vperm.xlu1 %1522, %v955_v30   ;;  %995 = vperm.xlu0 %1521, %v954_v31  }
 0x1e9   : > { %1004 = vperm.xlu1 %1522, %v957_v32   ;;  %1001 = vperm.xlu0 %1521, %v956_v33  }
 0x22c   : > { %v843_v34 = vpop.permute.xlu1 %842  ;;  %v833_v35 = vpop.permute.xlu0 %832 }
 0x22d   : > { %1523 = vrcp.f32 %v833_v35 }
 0x230   : > { %v848_v36 = vpop.permute.xlu1 %847  ;;  %v838_v37 = vpop.permute.xlu0 %837 }
 0x231   : > { %1525 = vrcp.f32 %v838_v37  ;;  %v1044_v37 = vld [vmem:[%s2041_s20 + $0x30] sm:$0xff] }
 0x232   : > { %1527 = vrcp.f32 %v843_v34  ;;  %v1045_v34 = vld [vmem:[%s2041_s20 + $0x38] sm:$0xff] }
 0x233   : > { %1529 = vrcp.f32 %v848_v36 }
 0x234   : > { %v858_v38 = vpop.permute.xlu1 %857  ;;  %v853_v39 = vpop.permute.xlu0 %852 }
 0x235   : > { %1531 = vrcp.f32 %v858_v38 }
 0x236   : > { %1533 = vrcp.f32 %v853_v39 }
 0x237   : > { %v1524_v48 = vpop.eup %1523 }
 0x238   : > { %v868_v40 = vpop.permute.xlu1 %867  ;;  %v863_v41 = vpop.permute.xlu0 %862  ;;  %v911_v58 = vmul.f32 %v1524_v48, %v814_v53  ;;  %v1047_v48 = vld [vmem:[%s2041_s20 + $0x48] sm:$0xff]  ;;  %v1046_v53 = vld [vmem:[%s2041_s20 + $0x40] sm:$0xff] }
 0x239   : > { %1535 = vrcp.f32 %v868_v40  ;;  %v823_v40 = vld [vmem:[#allocation2 + $0x48] sm:$0xff] }
 0x23a   : > { %1537 = vrcp.f32 %v863_v41  ;;  %v822_v41 = vld [vmem:[#allocation2 + $0x40] sm:$0xff] }
 0x23b   : > { %v1526_v51 = vpop.eup %1525 }
 0x23c   : > { %v878_v42 = vpop.permute.xlu1 %877  ;;  %v873_v43 = vpop.permute.xlu0 %872  ;;  %v913_v57 = vmul.f32 %v1526_v51, %v815_v52 }
 0x23d   : > { %v1528_v54 = vpop.eup %1527  ;;  %1539 = vrcp.f32 %v878_v42 }
 0x23e   : > { %v1530_v61 = vpop.eup %1529  ;;  %1541 = vrcp.f32 %v873_v43  ;;  %v915_v8 = vmul.f32 %v1528_v54, %v816_v63 }
 0x23f   : > { %v1532_v4 = vpop.eup %1531  ;;  %v917_v5 = vmul.f32 %v1530_v61, %v817_v62  ;;  %v1049_v62 = vld [vmem:[%s2041_s20 + $0x58] sm:$0xff] }
 0x240   : > { %v888_v44 = vpop.permute.xlu1 %887  ;;  %v883_v45 = vpop.permute.xlu0 %882  ;;  %v921_v19 = vmul.f32 %v1532_v4, %v819_v12  ;;  %v827_v4 = vld [vmem:[#allocation2 + $0x68] sm:$0xff] }
 0x241   : > { %v1534_v11 = vpop.eup %1533  ;;  %1543 = vrcp.f32 %v888_v44  ;;  %v1051_v12 = vld [vmem:[%s2041_s20 + $0x68] sm:$0xff] }
 0x242   : > { %1545 = vrcp.f32 %v883_v45  ;;  %v919_v22 = vmul.f32 %v1534_v11, %v818_v13 }
 0x243   : > { %v1536_v18 = vpop.eup %1535 }
 0x244   : > { %v2198_v46 = vpop.permute.xlu1 %897  ;;  %v2200_v47 = vpop.permute.xlu0 %892  ;;  %v925_v33 = vmul.f32 %v1536_v18, %v821_v26  ;;  %v829_v18 = vld [vmem:[#allocation2 + $0x78] sm:$0xff] }
 0x245   : > { %v1538_v25 = vpop.eup %1537  ;;  %1547 = vrcp.f32 %v2198_v46 }
 0x246   : > { %1549 = vrcp.f32 %v2200_v47  ;;  %v923_v36 = vmul.f32 %v1538_v25, %v820_v27  ;;  %v1053_v25 = vld [vmem:[%s2041_s20 + $0x78] sm:$0xff] }
 0x247   : > { %v1540_v32 = vpop.eup %1539 }
 0x248   : > { %v2202_v49 = vpop.permute.xlu1 %907  ;;  %v2204_v50 = vpop.permute.xlu0 %902  ;;  %v929_v47 = vmul.f32 %v1540_v32, %v823_v40 }
 0x249   : > { %v1542_v39 = vpop.eup %1541  ;;  %1551 = vrcp.f32 %v2202_v49  ;;  %v825_v49 = vld [vmem:[#allocation2 + $0x58] sm:$0xff] }
 0x24a   : > { %1553 = vrcp.f32 %v2204_v50  ;;  %v927_v52 = vmul.f32 %v1542_v39, %v822_v41  ;;  %v824_v50 = vld [vmem:[#allocation2 + $0x50] sm:$0xff] }
 0x24b   : > { %v1544_v46 = vpop.eup %1543 }
 0x24c   : > { %v963_v56 = vpop.permute.xlu1 %962  ;;  %v960_v60 = vpop.permute.xlu0 %959  ;;  %v933_v61 = vmul.f32 %v1544_v46, %v825_v49 }
 0x24d   : > { %vm1007_vm0 = vcmp.eq.s32.totalorder %v963_v56, 1  ;;  %vm1006_vm1 = vcmp.eq.s32.totalorder %v960_v60, 1 }
 0x24e   : > { %v1023_v0 = vsel %vm1007_vm0, %v913_v57, nan  ;;  %v1022_v1 = vsel %vm1006_vm1, %v911_v58, nan }
 0x24f   : > { %v1055_v2 = vadd.f32 %v1039_v55, %v1023_v0  ;;  %v1054_v3 = vadd.f32 %v1038_v59, %v1022_v1  ;;  %v1546_v55 = vpop.eup %1545  ;;  %v1048_v1 = vld [vmem:[%s2041_s20 + $0x50] sm:$0xff] }
 0x250   : > { %v969_v7 = vpop.permute.xlu1 %968  ;;  %v966_v10 = vpop.permute.xlu0 %965  ;;  %v931_v0 = vmul.f32 %v1546_v55, %v824_v50 }
 0x251   : > { %1071 = vst [vmem:[%s2068_s25 + $0x8] sm:$0xff] %v1055_v2  ;;  %1070 = vst [vmem:[%s2068_s25] sm:$0xff] %v1054_v3  ;;  %vm1009_vm2 = vcmp.eq.s32.totalorder %v969_v7, 1  ;;  %vm1008_vm3 = vcmp.eq.s32.totalorder %v966_v10, 1  ;;  %v1548_v60 = vpop.eup %1547 }
 0x252   : > { %v1025_v14 = vsel %vm1009_vm2, %v917_v5, nan  ;;  %v1024_v15 = vsel %vm1008_vm3, %v915_v8, nan  ;;  %v1550_v3 = vpop.eup %1549  ;;  %v826_v5 = vld [vmem:[#allocation2 + $0x60] sm:$0xff]  ;;  %v937_v11 = vmul.f32 %v1548_v60, %v827_v4 }
 0x253   : > { %v1057_v16 = vadd.f32 %v1041_v6, %v1025_v14  ;;  %v1056_v17 = vadd.f32 %v1040_v9, %v1024_v15  ;;  %v1552_v10 = vpop.eup %1551  ;;  %v935_v14 = vmul.f32 %v1550_v3, %v826_v5  ;;  %v1050_v15 = vld [vmem:[%s2041_s20 + $0x60] sm:$0xff] }
 0x254   : > { %v975_v21 = vpop.permute.xlu1 %974  ;;  %v972_v24 = vpop.permute.xlu0 %971 }
 0x255   : > { %1073 = vst [vmem:[%s2068_s25 + $0x18] sm:$0xff] %v1057_v16  ;;  %1072 = vst [vmem:[%s2068_s25 + $0x10] sm:$0xff] %v1056_v17  ;;  %vm1011_vm4 = vcmp.eq.s32.totalorder %v975_v21, 1  ;;  %vm1010_vm5 = vcmp.eq.s32.totalorder %v972_v24, 1  ;;  %v1554_v17 = vpop.eup %1553  ;;  %v941_v24 = vmul.f32 %v1552_v10, %v829_v18 }
 0x256   : > { %v1027_v28 = vsel %vm1011_vm4, %v921_v19, nan  ;;  %v1026_v29 = vsel %vm1010_vm5, %v919_v22, nan  ;;  %v828_v19 = vld [vmem:[#allocation2 + $0x70] sm:$0xff] }
 0x257   : > { %v1059_v30 = vadd.f32 %v1043_v20, %v1027_v28  ;;  %v1058_v31 = vadd.f32 %v1042_v23, %v1026_v29  ;;  %v939_v27 = vmul.f32 %v1554_v17, %v828_v19  ;;  %v1052_v28 = vld [vmem:[%s2041_s20 + $0x70] sm:$0xff]  ;;  %s1643_s20 = sshll.u32 %s1763_s16, 4  ;;  %s1644_s20 = int_to_ptr.vmem [resolvable:$false] %s1643_s20 }
 0x258   : > { %v981_v35 = vpop.permute.xlu1 %980  ;;  %v978_v38 = vpop.permute.xlu0 %977  ;;  %s1645_s21 = scalar_lea.vmem %s1644_s20, 4096  ;;  %p1646_p8 = scmp.lt.s32.totalorder %s2247_s4, %s1644_s20 }
 0x259   : > { %1075 = vst [vmem:[%s2068_s25 + $0x28] sm:$0xff] %v1059_v30  ;;  %1074 = vst [vmem:[%s2068_s25 + $0x20] sm:$0xff] %v1058_v31  ;;  %vm1013_vm6 = vcmp.eq.s32.totalorder %v981_v35, 1  ;;  %vm1012_vm7 = vcmp.eq.s32.totalorder %v978_v38, 1  ;;  %p1647_p12 = scmp.lt.s32.totalorder %s1645_s21, %s1639_s27 }
 0x25a   : > { %v1029_v42 = vsel %vm1013_vm6, %v925_v33, nan  ;;  %v1028_v43 = vsel %vm1012_vm7, %v923_v36, nan }
 0x25b   : > { %v1061_v44 = vadd.f32 %v1045_v34, %v1029_v42  ;;  %v1060_v45 = vadd.f32 %v1044_v37, %v1028_v43  ;;  %p1648_p3 = por %p1647_p12, %p1646_p8 }
 0x25c   : > { %v987_v51 = vpop.permute.xlu1 %986  ;;  %v984_v54 = vpop.permute.xlu0 %983 }
 0x25d   : > { %1077 = vst [vmem:[%s2068_s25 + $0x38] sm:$0xff] %v1061_v44  ;;  %1076 = vst [vmem:[%s2068_s25 + $0x30] sm:$0xff] %v1060_v45  ;;  %vm1015_vm8 = vcmp.eq.s32.totalorder %v987_v51, 1  ;;  %vm1014_vm9 = vcmp.eq.s32.totalorder %v984_v54, 1  ;;  %p1649_p4 = pnand %p1648_p3, %p1642_p10 }
 0x25e   : > { %v1031_v56 = vsel %vm1015_vm8, %v929_v47, nan  ;;  %v1030_v57 = vsel %vm1014_vm9, %v927_v52, nan }
 0x25f   : > { %v1063_v58 = vadd.f32 %v1047_v48, %v1031_v56  ;;  %v1062_v59 = vadd.f32 %v1046_v53, %v1030_v57 }
 0x260   : > { %v993_v63 = vpop.permute.xlu1 %992  ;;  %v990_v2 = vpop.permute.xlu0 %989 }
 0x261   : > { %1079 = vst [vmem:[%s2068_s25 + $0x48] sm:$0xff] %v1063_v58  ;;  %1078 = vst [vmem:[%s2068_s25 + $0x40] sm:$0xff] %v1062_v59  ;;  %vm1017_vm10 = vcmp.eq.s32.totalorder %v993_v63, 1  ;;  %vm1016_vm11 = vcmp.eq.s32.totalorder %v990_v2, 1 }
 0x262   : > { %v1033_v6 = vsel %vm1017_vm10, %v933_v61, nan  ;;  %v1032_v7 = vsel %vm1016_vm11, %v931_v0, nan }
 0x263   : > { %v1065_v8 = vadd.f32 %v1049_v62, %v1033_v6  ;;  %v1064_v9 = vadd.f32 %v1048_v1, %v1032_v7 }
 0x264   : > { %v999_v13 = vpop.permute.xlu1 %998  ;;  %v996_v16 = vpop.permute.xlu0 %995 }
 0x265   : > { %1081 = vst [vmem:[%s2068_s25 + $0x58] sm:$0xff] %v1065_v8  ;;  %1080 = vst [vmem:[%s2068_s25 + $0x50] sm:$0xff] %v1064_v9  ;;  %vm1019_vm12 = vcmp.eq.s32.totalorder %v999_v13, 1  ;;  %vm1018_vm13 = vcmp.eq.s32.totalorder %v996_v16, 1 }
 0x266   : > { %v1035_v20 = vsel %vm1019_vm12, %v937_v11, nan  ;;  %v1034_v21 = vsel %vm1018_vm13, %v935_v14, nan }
 0x267   : > { %v1067_v22 = vadd.f32 %v1051_v12, %v1035_v20  ;;  %v1066_v23 = vadd.f32 %v1050_v15, %v1034_v21 }
 0x268   : > { %v1005_v26 = vpop.permute.xlu1 %1004  ;;  %v1002_v29 = vpop.permute.xlu0 %1001 }
 0x269   : > { %1083 = vst [vmem:[%s2068_s25 + $0x68] sm:$0xff] %v1067_v22  ;;  %1082 = vst [vmem:[%s2068_s25 + $0x60] sm:$0xff] %v1066_v23  ;;  %vm1021_vm14 = vcmp.eq.s32.totalorder %v1005_v26, 1  ;;  %vm1020_vm15 = vcmp.eq.s32.totalorder %v1002_v29, 1 }
 0x26a   : > { %v1037_v30 = vsel %vm1021_vm14, %v941_v24, nan  ;;  %v1036_v31 = vsel %vm1020_vm15, %v939_v27, nan }
 0x26b   : > { %v1069_v32 = vadd.f32 %v1053_v25, %v1037_v30  ;;  %v1068_v33 = vadd.f32 %v1052_v28, %v1036_v31 }
 0x26d   : > { %1085 = vst [vmem:[%s2068_s25 + $0x78] sm:$0xff] %v1069_v32  ;;  %1084 = vst [vmem:[%s2068_s25 + $0x70] sm:$0xff] %v1068_v33 }
 0x26e   : > { %1652 = shalt.err (!%p1649_p4)
}
 0x26f   : > { %s1653_s29 = scalar_lea.hbm %s2245_s11, 2048  ;;  %s1657_s0 = scalar_lea.hbm %s2312_s6, 4096 }
 0x270   : > { %p1654_p9 = scmp.ne.s32.totalorder %s2245_s11, %s1653_s29  ;;  %p1658_p5 = scmp.lt.u32.totalorder %s2245_s11, %s2312_s6 }
 0x271   : > { %p1659_p11 = scmp.lt.u32.totalorder %s1657_s0, %s1653_s29  ;;  %p1661_p0 = scmp.lt.u32.totalorder %s1653_s29, %s2245_s11 }
 0x272   : > { %p1655_p2 = pnand %p1654_p9, %p2350_p13 }
 0x273   : > { %p1660_p7 = por %p1659_p11, %p1658_p5 }
 0x274   : > { %p1656_p1 = pneg %p1655_p2 }
 0x275   : > { %p1662_p6 = por %p1661_p0, %p1660_p7 }
 0x277   : > { %p1663_p10 = pnand %p1662_p6, %p1656_p1 }
 0x279   : > { %1666 = shalt.err (!%p1663_p10)
}
 0x27a   : > { %s1764_s28 = smov 128   ;;  %s1765_s23 = smov 8  }
 0x27b   : > { %1382 = dma.vmem_to_hbm [thread:$0]  (%p2350_p13), %s2247_s4, 2048, %s2245_s11, %s1087_s15, %s1764_s28, %s1764_s28, %s1765_s23  }
 0x27c PF: > { %s1115_s25 = sand.u32 1, %s1719_s1   ;;  %p2351_p8 = scmp.ne.s32.totalorder %s2342_s24, 0 }
 0x27d   : > { %p2352_p12 = scmp.ge.s32.totalorder %s1751_s13, 2  ;;  %s1116_s3 = scalar_lea.sflag [#allocation8], %s1115_s25 }
 0x27f   : > { %p1394_p3 = pnand %p2352_p12, %p2351_p8 }
 0x281   : > { %1714 = dma.done.wait (!%p1394_p3), %s1116_s3, 2048  }
 0x282   : > { %1716 = vsyncadd (!%p1394_p3), %s1116_s3, 4294965248  ;;  %s35_s13 = sadd.s32 1, %s1751_s13   ;;  %s2353_s14 = sld [smem:[#allocation18_spill]] }
 0x283   : > { %p32_p4 = scmp.ge.s32.totalorder %s35_s13, 4   ;;  %s2354_s10 = sld [smem:[#allocation21_spill]] }
 0x284   : > { %s2355_s11 = sld [smem:[#allocation19_spill]]  ;;  %s2356_s12 = sld [smem:[#allocation20_spill]] }
 0x285   : > { %s2357_s1 = smov %s1723_s30  ;;  %s2358_s30 = smov %s1727_s7 }
 0x286   : > { %s2359_s7 = smov %s1956_s26  ;;  %s2360_s8 = smov %s1735_s9 }
 0x287   :  { %34 = sbr.rel (!%p32_p4) target bundleno = 36 (0x24), region = 112 }
 0x288   : > { %s2361_s9 = smov %s2353_s14 }
 0x28e   :  { %1121 = vsyncpa [#allocation7], 1 }
 0x28f   :  { %1123 = vsyncpa [#allocation7 + $0x1], 1 }
 0x290   :  { %1124 = vsyncpa [#allocation10], 1 }
 0x291   :  { %1126 = vsyncpa [#allocation10 + $0x1], 1 }
 0x292   :  { %1127 = vsyncpa [#allocation8], 1 }
 0x293   :  { %1129 = vsyncpa [#allocation8 + $0x1], 1 }

</bundles_post_ra>
